<compile_context>
chip_gen: v7x
topology: tpu7x:2x2x1
jax: 0.10.0
libtpu: 0.0.40
codegen_flags: <defaults>
</compile_context>

<pallas_src>
import functools
import math

import jax
import jax.numpy as jnp
from jax.experimental import pallas as pl
from jax.experimental.pallas import tpu as pltpu

LANE = 128
# Native sublane tile per element size: sub-32-bit dtypes pack rows along the
# sublane axis, so block_rows must round to this for unmasked loads/stores.
_SUBLANE_TILE = {4: 8, 2: 16, 1: 32}
# Keep at least this many grid steps (when the tensor is big enough) so both
# v7x TensorCores get work and the double-buffer pipeline has overlap.
_MIN_GRID_STEPS = 8


def _maxout_kernel(level, compute_dtype, k_ref, b_ref, x_ref, o_ref):
    """out = max_l (k[l]*x + b[l]) on one (block_rows, cols) tile.

    k_ref, b_ref : SMEM refs of shape (level,), float32 scalars
    x_ref, o_ref : VMEM tiles (block_rows, cols) in the caller's dtype
    """
    # Hoist scalar parameter loads (and casts) once, outside the unrolled chain.
    ks = [k_ref[l].astype(compute_dtype) for l in range(level)]
    bs = [b_ref[l].astype(compute_dtype) for l in range(level)]

    x = x_ref[...].astype(compute_dtype)   # no-op when compute_dtype == native dtype
    out = ks[0] * x + bs[0]
    for l in range(1, level):              # level is tiny -> static unroll
        out = jnp.maximum(out, ks[l] * x + bs[l])
    o_ref[...] = out.astype(o_ref.dtype)


def _maxout_tail(x_flat, kf, bf, compute_dtype, out_dtype):
    """Plain-jnp maxout for a tiny (<128 element) tail / tiny tensors."""
    xc = x_flat.astype(compute_dtype)
    y = jnp.max(
        xc[None, :] * kf.astype(compute_dtype)[:, None]
        + bf.astype(compute_dtype)[:, None],
        axis=0,
    )
    return y.astype(out_dtype)


def _maxout_pallas_flat(x_flat, kf, bf, level, compute_dtype, target_block_bytes):
    """Maxout over a flat array whose length is a multiple of 128."""
    n = x_flat.shape[0]
    dtype = x_flat.dtype
    itemsize = jnp.dtype(dtype).itemsize

    # Lane-dense slab: big multiple of 128 as the last dim -> unmasked vld/vst.
    cols = LANE
    for c in (4096, 2048, 1024, 512, 256, 128):
        if n % c == 0:
            cols = c
            break
    rows = n // cols

    row_tile = _SUBLANE_TILE.get(itemsize, 8)
    if rows <= row_tile:
        block_rows = rows                  # full extent (satisfies the (8,128) rule)
    else:
        # ~target_block_bytes per tile, rounded to the dtype-native sublane tile.
        br = max(row_tile, target_block_bytes // (cols * itemsize))
        br = max(row_tile, (br // row_tile) * row_tile)
        # Cap so the grid has >= _MIN_GRID_STEPS steps (megacore + pipelining).
        per_min = -(-rows // _MIN_GRID_STEPS)
        per_min = max(row_tile, -(-per_min // row_tile) * row_tile)
        block_rows = min(br, per_min)

    grid = (pl.cdiv(rows, block_rows),)    # partial last block masked by Pallas

    block_bytes = block_rows * cols * itemsize
    # Double-buffered in+out plus in-kernel temporaries; 32 MiB floor is below
    # physical VMEM on every current gen (v5e/v6e: 128 MiB, v7x: 64 MiB).
    vmem_limit = int(min(max(32 << 20, 6 * block_bytes), 64 << 20))

    out2d = pl.pallas_call(
        functools.partial(_maxout_kernel, level, compute_dtype),
        out_shape=jax.ShapeDtypeStruct((rows, cols), dtype),
        grid_spec=pltpu.PrefetchScalarGridSpec(
            num_scalar_prefetch=0,
            grid=grid,
            in_specs=[
                # Tiny scalar parameter vectors: keep them whole in SMEM.
                pl.BlockSpec(memory_space=pltpu.SMEM),
                pl.BlockSpec(memory_space=pltpu.SMEM),
                # x streamed lane-dense in its native dtype.
                pl.BlockSpec((block_rows, cols), lambda i: (i, 0)),
            ],
            out_specs=pl.BlockSpec((block_rows, cols), lambda i: (i, 0)),
        ),
        compiler_params=pltpu.CompilerParams(
            dimension_semantics=("parallel",),   # shards grid across v7x TCs
            vmem_limit_bytes=vmem_limit,
        ),
        cost_estimate=pl.CostEstimate(
            flops=(3 * level - 1) * n,           # level muls + level adds + (level-1) maxes
            transcendentals=0,
            bytes_accessed=2 * n * itemsize + 2 * level * 4,
        ),
    )(kf, bf, x_flat.reshape(rows, cols))
    return out2d.reshape(-1)


def maxout(x, k, b, *, target_block_bytes=2 << 20, compute_dtype=None):
    """Maxout forward: out[...] = max_l (k[l] * x[...] + b[l]).

    x: any shape.  k, b: shape (level, 1, 1, 1, 1) (anything reshapeable to (level,)).
    target_block_bytes: ~2 MiB works on all gens; raise to 4 MiB on v7x if desired.
    compute_dtype: None -> native dtype for f32/bf16 inputs (bf16 VPU on v6e/v7x),
      float32 for everything else.  Pass jnp.float32 to force f32 compute
      (e.g. for bf16 inputs on v5e, which has no bf16 VALU).
    """
    level = k.shape[0]
    kf = k.reshape(level).astype(jnp.float32)
    bf = b.reshape(level).astype(jnp.float32)

    orig_shape = x.shape
    dtype = x.dtype
    total = math.prod(orig_shape)
    if total == 0:
        return x

    if compute_dtype is None:
        compute_dtype = dtype if dtype in (jnp.float32, jnp.bfloat16) else jnp.float32

    x_flat = x.reshape(-1)                 # contiguous reshape: free
    aligned = (total // LANE) * LANE

    if aligned == 0:
        # Tiny (<128 element) tensor: a kernel launch isn't worth it.
        return _maxout_tail(x_flat, kf, bf, compute_dtype, dtype).reshape(orig_shape)

    if aligned == total:
        out_flat = _maxout_pallas_flat(
            x_flat, kf, bf, level, compute_dtype, target_block_bytes)
    else:
        # Unaligned total: kernel over the 128-aligned prefix, tiny tail in jnp
        # (avoids the full-tensor pad + slice HBM pass of the old fallback).
        out_main = _maxout_pallas_flat(
            x_flat[:aligned], kf, bf, level, compute_dtype, target_block_bytes)
        out_tail = _maxout_tail(x_flat[aligned:], kf, bf, compute_dtype, dtype)
        out_flat = jnp.concatenate([out_main, out_tail])

    return out_flat.reshape(orig_shape)


if __name__ == "__main__":
    key = jax.random.PRNGKey(0)
    k_in, k_k, k_b = jax.random.split(key, 3)

    level = 4
    N, C, H, W = 2, 4, 16, 16

    x = jax.random.normal(k_in, (N, C, H, W), dtype=jnp.float32)
    # Deterministic (non-trivial) parameters with the module's shapes.
    k = jax.random.normal(k_k, (level, 1, 1, 1, 1), dtype=jnp.float32)
    b = jax.random.normal(k_b, (level, 1, 1, 1, 1), dtype=jnp.float32)

    # Pure-JAX reference of the PyTorch forward (f32).
    ref = jnp.max(x[None, ...] * k + b, axis=0)

    # 1) f32, 128-aligned total.
    out = jax.block_until_ready(maxout(x, k, b))
    assert out.shape == (N, C, H, W) and out.dtype == x.dtype
    assert jnp.allclose(out, ref, atol=1e-6, rtol=1e-6), "f32 mismatch vs reference"

    # 2) bf16 native-compute path (bf16 throughout, like a bf16 module -> loose tol).
    xb = x.astype(jnp.bfloat16)
    out_b = jax.block_until_ready(maxout(xb, k, b))
    assert out_b.dtype == jnp.bfloat16
    assert jnp.allclose(out_b.astype(jnp.float32), ref, atol=0.25, rtol=0.05), \
        "bf16 mismatch vs reference"

    # 3) Unaligned total (399 elems): aligned prefix in-kernel + jnp tail, no pad pass.
    x_odd = jax.random.normal(k_in, (3, 7, 19), dtype=jnp.float32)
    out_odd = jax.block_until_ready(maxout(x_odd, k, b))
    ref_odd = jnp.max(
        x_odd[None, ...] * k.reshape(level, 1, 1, 1) + b.reshape(level, 1, 1, 1), axis=0)
    assert jnp.allclose(out_odd, ref_odd, atol=1e-6, rtol=1e-6), "odd-shape mismatch"

    print("KERNEL_OK")
</pallas_src>

<mosaic_0001>
module attributes {stable_mosaic.version = 11 : i64} {
  func.func @_maxout_kernel(%arg0: i32, %arg1: memref<4xf32, #tpu.memory_space<smem>>, %arg2: memref<4xf32, #tpu.memory_space<smem>>, %arg3: memref<1x2048xf32, #tpu.memory_space<vmem>>, %arg4: memref<1x2048xf32, #tpu.memory_space<vmem>>) attributes {dimension_semantics = [#tpu.dimension_semantics<parallel>], iteration_bounds = array<i64: 1>, scalar_prefetch = 0 : i64, scratch_operands = 0 : i64, tpu.core_type = #tpu.core_type<tc>, window_params = [{transform_indices = @transform_0, window_bounds = array<i64: 4>}, {transform_indices = @transform_1, window_bounds = array<i64: 4>}, {transform_indices = @transform_2, window_bounds = array<i64: 1, 2048>}, {transform_indices = @transform_3, window_bounds = array<i64: 1, 2048>}]} {
    %c0 = arith.constant 0 : index
    %0 = memref.load %arg1[%c0] : memref<4xf32, #tpu.memory_space<smem>>
    %c1 = arith.constant 1 : index
    %1 = memref.load %arg1[%c1] : memref<4xf32, #tpu.memory_space<smem>>
    %c2 = arith.constant 2 : index
    %2 = memref.load %arg1[%c2] : memref<4xf32, #tpu.memory_space<smem>>
    %c3 = arith.constant 3 : index
    %3 = memref.load %arg1[%c3] : memref<4xf32, #tpu.memory_space<smem>>
    %c0_0 = arith.constant 0 : index
    %4 = memref.load %arg2[%c0_0] : memref<4xf32, #tpu.memory_space<smem>>
    %c1_1 = arith.constant 1 : index
    %5 = memref.load %arg2[%c1_1] : memref<4xf32, #tpu.memory_space<smem>>
    %c2_2 = arith.constant 2 : index
    %6 = memref.load %arg2[%c2_2] : memref<4xf32, #tpu.memory_space<smem>>
    %c3_3 = arith.constant 3 : index
    %7 = memref.load %arg2[%c3_3] : memref<4xf32, #tpu.memory_space<smem>>
    %c0_4 = arith.constant 0 : index
    %c0_5 = arith.constant 0 : index
    %8 = vector.load %arg3[%c0_4, %c0_5] : memref<1x2048xf32, #tpu.memory_space<vmem>>, vector<1x2048xf32>
    %9 = vector.broadcast %0 : f32 to vector<1x2048xf32>
    %10 = arith.mulf %9, %8 : vector<1x2048xf32>
    %11 = vector.broadcast %4 : f32 to vector<1x2048xf32>
    %12 = arith.addf %10, %11 : vector<1x2048xf32>
    %13 = vector.broadcast %1 : f32 to vector<1x2048xf32>
    %14 = arith.mulf %13, %8 : vector<1x2048xf32>
    %15 = vector.broadcast %5 : f32 to vector<1x2048xf32>
    %16 = arith.addf %14, %15 : vector<1x2048xf32>
    %17 = arith.maximumf %12, %16 : vector<1x2048xf32>
    %18 = vector.broadcast %2 : f32 to vector<1x2048xf32>
    %19 = arith.mulf %18, %8 : vector<1x2048xf32>
    %20 = vector.broadcast %6 : f32 to vector<1x2048xf32>
    %21 = arith.addf %19, %20 : vector<1x2048xf32>
    %22 = arith.maximumf %17, %21 : vector<1x2048xf32>
    %23 = vector.broadcast %3 : f32 to vector<1x2048xf32>
    %24 = arith.mulf %23, %8 : vector<1x2048xf32>
    %25 = vector.broadcast %7 : f32 to vector<1x2048xf32>
    %26 = arith.addf %24, %25 : vector<1x2048xf32>
    %27 = arith.maximumf %22, %26 : vector<1x2048xf32>
    %c0_6 = arith.constant 0 : index
    %c0_7 = arith.constant 0 : index
    %28 = vector.load %arg4[%c0_6, %c0_7] : memref<1x2048xf32, #tpu.memory_space<vmem>>, vector<1x2048xf32>
    tpu.vector_store %arg4[%c0_6, %c0_7], %27 {strides = array<i32>} : memref<1x2048xf32, #tpu.memory_space<vmem>>, vector<1x2048xf32>,
    return
  }
  func.func @transform_0(%arg0: i32) -> i32 {
    %c0_i32 = arith.constant 0 : i32
    %c0_i32_0 = arith.constant 0 : i32
    return %c0_i32 : i32
  }
  func.func @transform_1(%arg0: i32) -> i32 {
    %c0_i32 = arith.constant 0 : i32
    %c0_i32_0 = arith.constant 0 : i32
    return %c0_i32 : i32
  }
  func.func @transform_2(%arg0: i32) -> (i32, i32) {
    %c0_i32 = arith.constant 0 : i32
    %c0_i32_0 = arith.constant 0 : i32
    return %arg0, %c0_i32 : i32, i32
  }
  func.func @transform_3(%arg0: i32) -> (i32, i32) {
    %c0_i32 = arith.constant 0 : i32
    %c0_i32_0 = arith.constant 0 : i32
    return %arg0, %c0_i32 : i32, i32
  }
}

</mosaic_0001>

<bundles_post_ra>
// kernel: tpu_custom_call.1
= control target key start
LH: loop header
LB: loop body
LE: loop exit
PB: predicated region body
PF: predicated region fallthrough
CT: control target
= control target key end

     0   :  { %8 = vsyncpa [#allocation5], 0  ;;  %s256_s0 = inlined_call_operand.hbm [shape: f32[4], index: 0, kind: input, shape index: {}]   ;;  %s257_s1 = inlined_call_operand.vmem [shape: f32[4], index: 1, kind: input, shape index: {}]   ;;  %s258_s2 = inlined_call_operand.hbm [shape: f32[1,2048], index: 2, kind: input, shape index: {}]   ;;  %s259_s3 = inlined_call_operand.hbm [shape: f32[1,2048], index: 3, kind: output, shape index: {}]  }
   0x1   :  { %9 = vsyncpa [#allocation6], 0 }
   0x2   :  { %10 = vsyncpa [#allocation3], 0 }
   0x3   :  { %11 = vsyncpa [#allocation4], 0  ;;  %s26_s14 = sshll.u32 %s257_s1, 4  ;;  %s119_s17 = scalar_lea.hbm %s256_s0, 16  ;;  %s27_s14 = int_to_ptr.vmem [resolvable:$true] %s26_s14 }
   0x4   :  { %p120_p0 = scmp.ne.s32.totalorder %s256_s0, %s119_s17  ;;  %p123_p1 = scmp.lt.u32.totalorder %s119_s17, %s256_s0 }
   0x6   :  { %p125_p2 = pnand %p123_p1, %p120_p0 }
   0x8   :  { %128 = shalt.err (!%p125_p2)
}
   0x9   :  { %s193_s22 = smov [#allocation2]   ;;  %s129_s1 = scalar_lea.vmem %s27_s14, 16 }
   0xa   :  { %19 = dma.hbm_to_smem %s256_s0, 16, %s193_s22, [#allocation5]  }
   0xb   :  { %p130_p3 = scmp.ne.s32.totalorder %s27_s14, %s129_s1  ;;  %p134_p4 = scmp.lt.s32.totalorder %s27_s14, %s27_s14 }
   0xc   :  { %p135_p5 = scmp.lt.s32.totalorder %s129_s1, %s129_s1 }
   0xe   :  { %p136_p6 = por %p135_p5, %p134_p4 }
  0x10   :  { %p137_p7 = pnand %p136_p6, %p130_p3 }
  0x12   :  { %140 = shalt.err (!%p137_p7)
}
  0x13   :  { %s194_s25 = smov [#allocation7]   ;;  %s195_s26 = smov [#allocation8]  }
  0x14   :  { %29 = dma.vmem_to_smem %s27_s14, 16, %s194_s25, [#allocation6]  }
  0x15   :  { %s36_s27 = sshll.u32 %s195_s26, 4  ;;  %s141_s30 = scalar_lea.hbm %s258_s2, 256  ;;  %s37_s27 = int_to_ptr.vmem [resolvable:$true] %s36_s27 }
  0x16   :  { %p142_p8 = scmp.ne.s32.totalorder %s258_s2, %s141_s30  ;;  %p145_p9 = scmp.lt.u32.totalorder %s141_s30, %s258_s2 }
  0x18   :  { %p147_p10 = pnand %p145_p9, %p142_p8 }
  0x1a   :  { %150 = shalt.err (!%p147_p10)
}
  0x1b   :  { %s151_s7 = scalar_lea.vmem %s37_s27, 256  ;;  %p156_p12 = scmp.lt.s32.totalorder %s37_s27, %s37_s27 }
  0x1c   :  { %p152_p11 = scmp.ne.s32.totalorder %s37_s27, %s151_s7  ;;  %p157_p13 = scmp.lt.s32.totalorder %s151_s7, %s151_s7 }
  0x1e   :  { %p158_p0 = por %p157_p13, %p156_p12 }
  0x20   :  { %p159_p1 = pnand %p158_p0, %p152_p11 }
  0x22   :  { %162 = shalt.err (!%p159_p1)
}
  0x23   :  { %39 = dma.hbm_to_vmem [thread:$0]  %s258_s2, 256, %s37_s27, [#allocation3]  }
  0x24   :  { %185 = dma.done.wait [#allocation5], 16  }
  0x25   :  { %186 = vsyncadd [#allocation5], 4294967280 }
  0x26   :  { %187 = dma.done.wait [#allocation6], 16  }
  0x27   :  { %188 = vsyncadd [#allocation6], 4294967280 }
  0x28   :  { %189 = dma.done.wait [#allocation3], 256  }
  0x29   :  { %190 = vsyncadd [#allocation3], 4294967040 }
  0x2a   :  { %49 = sfence }
  0x2b   :  { %s50_s10 = sld [smem:[#allocation2]]  ;;  %s109_s11 = sld [smem:[#allocation2 + $0x1]]  ;;  %v58_v0 = vld [vmem:[#allocation8] sm:$0xff]  ;;  %v59_v7 = vld [vmem:[#allocation8 + $0x8] sm:$0xff] }
  0x2c   :  { %s110_s12 = sld [smem:[#allocation2 + $0x2]]  ;;  %s111_s13 = sld [smem:[#allocation2 + $0x3]] }
  0x2d   :  { %s54_s14 = sld [smem:[#allocation7]]  ;;  %s112_s15 = sld [smem:[#allocation7 + $0x1]] }
  0x2e   :  { %s113_s16 = sld [smem:[#allocation7 + $0x2]]  ;;  %s114_s17 = sld [smem:[#allocation7 + $0x3]] }
  0x2f   :  { %s196_s2 = smov [#allocation9]  }
  0x30   :  { %s98_s18 = sshll.u32 %s196_s2, 4  ;;  %s99_s18 = int_to_ptr.vmem [resolvable:$true] %s98_s18 }
  0x31   :  { %v60_v1 = vstv %s50_s10  ;;  %v66_v2 = vstv %s109_s11  ;;  %s163_s19 = scalar_lea.vmem %s99_s18, 256  ;;  %p168_p3 = scmp.lt.s32.totalorder %s99_s18, %s99_s18 }
  0x32   :  { %v61_v3 = vmul.f32 %v60_v1, %v58_v0  ;;  %v67_v4 = vmul.f32 %v66_v2, %v58_v0  ;;  %v74_v5 = vstv %s110_s12  ;;  %v82_v6 = vstv %s111_s13  ;;  %p164_p2 = scmp.ne.s32.totalorder %s99_s18, %s163_s19  ;;  %p169_p4 = scmp.lt.s32.totalorder %s163_s19, %s163_s19 }
  0x33   :  { %v63_v8 = vstv %s54_s14  ;;  %v69_v9 = vstv %s112_s15  ;;  %v75_v10 = vmul.f32 %v74_v5, %v58_v0  ;;  %v83_v11 = vmul.f32 %v82_v6, %v58_v0 }
  0x34   :  { %v64_v12 = vadd.f32 %v63_v8, %v61_v3  ;;  %v70_v13 = vadd.f32 %v69_v9, %v67_v4  ;;  %v77_v14 = vstv %s113_s16  ;;  %v85_v15 = vstv %s114_s17  ;;  %p170_p5 = por %p169_p4, %p168_p3 }
  0x35   :  { %v78_v16 = vadd.f32 %v77_v14, %v75_v10  ;;  %v62_v17 = vmul.f32 %v60_v1, %v59_v7  ;;  %v68_v18 = vmul.f32 %v66_v2, %v59_v7  ;;  %v86_v20 = vadd.f32 %v85_v15, %v83_v11 }
  0x36   :  { %v72_v19 = vmax.f32 %v64_v12, %v70_v13  ;;  %v76_v21 = vmul.f32 %v74_v5, %v59_v7  ;;  %v84_v22 = vmul.f32 %v82_v6, %v59_v7  ;;  %p171_p6 = pnand %p170_p5, %p164_p2 }
  0x37   :  { %v65_v23 = vadd.f32 %v63_v8, %v62_v17  ;;  %v71_v24 = vadd.f32 %v69_v9, %v68_v18 }
  0x38   :  { %v80_v25 = vmax.f32 %v72_v19, %v78_v16  ;;  %v79_v26 = vadd.f32 %v77_v14, %v76_v21  ;;  %v87_v28 = vadd.f32 %v85_v15, %v84_v22 }
  0x39   :  { %v73_v27 = vmax.f32 %v65_v23, %v71_v24 }
  0x3a   :  { %v88_v29 = vmax.f32 %v80_v25, %v86_v20 }
  0x3b   :  { %v81_v30 = vmax.f32 %v73_v27, %v79_v26 }
  0x3c   :  { %90 = vst [vmem:[#allocation9] sm:$0xff] %v88_v29 }
  0x3d   :  { %v89_v31 = vmax.f32 %v81_v30, %v87_v28 }
  0x3f   :  { %91 = vst [vmem:[#allocation9 + $0x8] sm:$0xff] %v89_v31 }
  0x40   :  { %174 = shalt.err (!%p171_p6)
}
  0x41   :  { %s175_s22 = scalar_lea.hbm %s259_s3, 256 }
  0x42   :  { %p176_p7 = scmp.ne.s32.totalorder %s259_s3, %s175_s22  ;;  %p179_p8 = scmp.lt.u32.totalorder %s175_s22, %s259_s3 }
  0x44   :  { %p181_p9 = pnand %p179_p8, %p176_p7 }
  0x46   :  { %184 = shalt.err (!%p181_p9)
}
  0x47   :  { %101 = dma.vmem_to_hbm [thread:$0]  %s99_s18, 256, %s259_s3, [#allocation4]  }
  0x48   :  { %191 = dma.done.wait [#allocation4], 256  }
  0x49   :  { %192 = vsyncadd [#allocation4], 4294967040 }
  0x4a   :  { %105 = vsyncpa [#allocation3], 1 }
  0x4b   :  { %106 = vsyncpa [#allocation4], 1 }
  0x4c   :  { %107 = vsyncpa [#allocation5], 1 }
  0x4d   :  { %108 = vsyncpa [#allocation6], 1 }

</bundles_post_ra>
